<compile_context>
chip_gen: v5e
topology: v5e:2x2
jax: 0.10.0
libtpu: 0.0.40
codegen_flags: <defaults>
</compile_context>

<pallas_src>
import functools

import jax
import jax.numpy as jnp
from jax.experimental import pallas as pl
from jax.experimental.pallas import tpu as pltpu


def _const_index_map(i):
    # Weights/biases are resident across all grid steps.
    return (0, 0)


def _critic_kernel(num_hidden, xu_ref, *refs):
    """Fused MLP forward, feature-major layout.

    xu_ref : (D_in, batch_tile) f32, batch on the lane axis.
    refs   : (W_0, b_0, ..., W_{nh-1}, b_{nh-1}, wf_col, bf, out_ref)
             W_l : (out_l, in_l)   b_l : (out_l, 1)
             wf_col : (hidden_last, 1)   bf : (1, 1)
             out_ref : (1, batch_tile)  -- lane-dense row.
    """
    out_ref = refs[-1]

    h = xu_ref[...]  # (D_in, batch_tile) f32
    for l in range(num_hidden):
        w = refs[2 * l][...]        # (out_l, in_l)
        b = refs[2 * l + 1][...]    # (out_l, 1), broadcasts over batch lanes
        h = jnp.dot(w, h, preferred_element_type=jnp.float32) + b  # MXU, f32 acc
        h = jnp.maximum(h, 0.0)

    # Scalar head: VPU multiply + sublane (XLU) reduce -> (1, batch_tile) row.
    wf = refs[2 * num_hidden][...]       # (hidden_last, 1)
    bf = refs[2 * num_hidden + 1][...]   # (1, 1)
    out_ref[...] = jnp.sum(h * wf, axis=0, keepdims=True) + bf


def _num_tensorcores():
    """Best-effort TensorCores-per-chip: v7x/v4/v5p expose 2 the 'parallel' grid
    axis can shard across; v5e/v6e have 1.  Unknown devices default to 1."""
    try:
        kind = jax.devices()[0].device_kind.lower()
    except Exception:
        return 1
    return 2 if any(t in kind for t in ("v7", "v5p", "v4")) else 1


def _pick_batch_tile(batch, num_cores, max_tile=4096):
    """Single-TC: one maximal tile (extra grid steps are pure ~0.35us overhead).
    Multi-TC: an even number of 128-multiple steps so both cores get equal work
    (ideally exactly 2 steps).  Feature-major tiles are tiny in VMEM, so the cap
    is generous and safe on every generation's default scoped VMEM."""
    if num_cores > 1 and batch % (128 * num_cores) == 0:
        tile = batch // num_cores
        while tile > max_tile and tile % 256 == 0:
            tile //= 2
        if tile % 128 == 0 and tile <= 4 * max_tile:
            return tile
    if batch <= max_tile:
        return batch
    for cand in (4096, 2048, 1024, 512, 256, 128):
        if cand <= max_tile and batch % cand == 0:
            return cand
    return batch


def critic_net_l2_forward(x, u, params, *, batch_tile=None, num_cores=None):
    """params: list of (W, b) with W in torch orientation (out, in) and b (out, 1)
    (or (out,)); the last entry is the scalar head.  Returns shape (B,)."""
    B, d_x = x.shape
    Bu, d_u = u.shape
    assert B == Bu, (B, Bu)
    num_hidden = len(params) - 1
    wf, bf = params[-1]
    assert wf.shape[0] == 1, "kernel implements the scalar (output_size=1) head"

    if num_cores is None:
        num_cores = _num_tensorcores()
    if batch_tile is None:
        batch_tile = _pick_batch_tile(B, num_cores)
    assert B % batch_tile == 0, (B, batch_tile)
    assert batch_tile == B or batch_tile % 128 == 0, (
        "batch_tile must equal the batch or be a multiple of 128")

    d_in = d_x + d_u
    # Feature-major operand: batch on the lane axis, features on sublanes.  The
    # concat+transpose is ~64 B/row of XLA glue, removes all lane padding in the
    # kernel's activation tiles, and fuses the concat (no separate W0x/W0u).
    xu_t = jnp.transpose(jnp.concatenate((x, u), axis=-1))  # (d_in, B)

    flat_params = []
    for (w, b) in params[:-1]:
        flat_params.append(w.astype(jnp.float32))                 # (out, in)
        flat_params.append(b.reshape(-1, 1).astype(jnp.float32))  # (out, 1)
    flat_params.append(wf.reshape(-1, 1).astype(jnp.float32))     # (hidden_last, 1)
    flat_params.append(bf.reshape(1, 1).astype(jnp.float32))      # (1, 1)

    # Resident params are double-buffered by default; single-buffer them only
    # when they are big enough to matter (v7x VMEM hygiene at large hidden sizes).
    weight_bytes = sum(int(p.size) * p.dtype.itemsize for p in flat_params)
    single_buffer_weights = weight_bytes > (4 << 20)

    in_specs = [pl.BlockSpec((d_in, batch_tile), lambda i: (0, i))]
    for p in flat_params:
        if single_buffer_weights:
            in_specs.append(
                pl.BlockSpec(p.shape, _const_index_map, pipeline_mode=pl.Buffered(1)))
        else:
            in_specs.append(pl.BlockSpec(p.shape, _const_index_map))

    # Lane-dense (1, batch_tile) output row -> unmasked stores.
    out_spec = pl.BlockSpec((1, batch_tile), lambda i: (0, i))

    result = pl.pallas_call(
        functools.partial(_critic_kernel, num_hidden),
        out_shape=jax.ShapeDtypeStruct((1, B), jnp.float32),
        grid_spec=pltpu.PrefetchScalarGridSpec(
            num_scalar_prefetch=0,
            grid=(B // batch_tile,),
            in_specs=in_specs,
            out_specs=out_spec,
        ),
        compiler_params=pltpu.CompilerParams(
            dimension_semantics=("parallel",),
        ),
    )(xu_t, *flat_params)

    return jnp.reshape(result, (B,))  # glue: squeeze(-1) of the original module


def init_params(key, state_size, action_size, hidden_sizes, output_size=1):
    """Matches the PyTorch module's init:
       - orthogonal_ on every Linear weight, stored in torch (out, in) orientation
       - default Linear bias init: U(-1/sqrt(fan_in), 1/sqrt(fan_in)), stored (out, 1)
    """
    orth = jax.nn.initializers.orthogonal()
    params = []
    in_size = state_size + action_size
    for h in list(hidden_sizes) + [output_size]:
        key, kw, kb = jax.random.split(key, 3)
        w = orth(kw, (h, in_size), jnp.float32)          # (out, in), like torch
        bound = 1.0 / float(in_size) ** 0.5
        b = jax.random.uniform(kb, (h, 1), jnp.float32, -bound, bound)
        params.append((w, b))
        in_size = h
    return params


if __name__ == "__main__":
    STATE_SIZE = 12
    ACTION_SIZE = 4
    HIDDEN_SIZES = (32, 32)
    OUTPUT_SIZE = 1

    key = jax.random.PRNGKey(0)
    kx, ku, kp = jax.random.split(key, 3)
    params = init_params(kp, STATE_SIZE, ACTION_SIZE, HIDDEN_SIZES, OUTPUT_SIZE)

    # NOTE: average_reward_offset is a stored attribute unused in forward(); omitted.

    def ref_forward(x, u, params):
        h = jnp.concatenate((x, u), axis=-1)
        for (w, b) in params[:-1]:
            h = jnp.maximum(h @ w.T + b.reshape(1, -1), 0.0)
        wf, bf = params[-1]
        return jnp.squeeze(h @ wf.T + bf.reshape(1, -1), axis=-1)

    # B=8: single-tile (block == full array) path.
    # B=256: auto-tiled (1 step on single-TC v5e/v6e, 2 even 128-row steps on v7x).
    # B=512 with explicit batch_tile=128: multi-step tiled path on any chip.
    cases = [(8, None), (256, None), (512, 128)]
    for B, tile in cases:
        x = jax.random.normal(jax.random.fold_in(kx, B), (B, STATE_SIZE), jnp.float32)
        u = jax.random.normal(jax.random.fold_in(ku, B), (B, ACTION_SIZE), jnp.float32)

        out = jax.block_until_ready(
            critic_net_l2_forward(x, u, params, batch_tile=tile))
        ref = ref_forward(x, u, params)

        assert out.shape == (B,), out.shape
        assert jnp.allclose(out, ref, atol=1e-4, rtol=1e-4), (out, ref)

    print("KERNEL_OK")
</pallas_src>

<mosaic_0001>
module attributes {stable_mosaic.version = 11 : i64} {
  func.func @_critic_kernel(%arg0: i32, %arg1: memref<16x8xf32, #tpu.memory_space<vmem>>, %arg2: memref<32x16xf32, #tpu.memory_space<vmem>>, %arg3: memref<32x1xf32, #tpu.memory_space<vmem>>, %arg4: memref<32x32xf32, #tpu.memory_space<vmem>>, %arg5: memref<32x1xf32, #tpu.memory_space<vmem>>, %arg6: memref<32x1xf32, #tpu.memory_space<vmem>>, %arg7: memref<1x1xf32, #tpu.memory_space<vmem>>, %arg8: memref<1x8xf32, #tpu.memory_space<vmem>>) attributes {dimension_semantics = [#tpu.dimension_semantics<parallel>], iteration_bounds = array<i64: 1>, scalar_prefetch = 0 : i64, scratch_operands = 0 : i64, tpu.core_type = #tpu.core_type<tc>, window_params = [{transform_indices = @transform_0, window_bounds = array<i64: 16, 8>}, {pipeline_mode = #tpu.pipeline_mode<synchronous>, transform_indices = @transform_1, window_bounds = array<i64: 32, 16>}, {pipeline_mode = #tpu.pipeline_mode<synchronous>, transform_indices = @transform_2, window_bounds = array<i64: 32, 1>}, {pipeline_mode = #tpu.pipeline_mode<synchronous>, transform_indices = @transform_3, window_bounds = array<i64: 32, 32>}, {pipeline_mode = #tpu.pipeline_mode<synchronous>, transform_indices = @transform_4, window_bounds = array<i64: 32, 1>}, {pipeline_mode = #tpu.pipeline_mode<synchronous>, transform_indices = @transform_5, window_bounds = array<i64: 32, 1>}, {pipeline_mode = #tpu.pipeline_mode<synchronous>, transform_indices = @transform_6, window_bounds = array<i64: 1, 1>}, {transform_indices = @transform_7, window_bounds = array<i64: 1, 8>}]} {
    %c0 = arith.constant 0 : index
    %c0_0 = arith.constant 0 : index
    %0 = vector.load %arg1[%c0, %c0_0] : memref<16x8xf32, #tpu.memory_space<vmem>>, vector<16x8xf32>
    %c0_1 = arith.constant 0 : index
    %c0_2 = arith.constant 0 : index
    %1 = vector.load %arg2[%c0_1, %c0_2] : memref<32x16xf32, #tpu.memory_space<vmem>>, vector<32x16xf32>
    %c0_3 = arith.constant 0 : index
    %c0_4 = arith.constant 0 : index
    %2 = vector.load %arg3[%c0_3, %c0_4] : memref<32x1xf32, #tpu.memory_space<vmem>>, vector<32x1xf32>
    %cst = arith.constant dense<0.000000e+00> : vector<32x8xf32>
    %3 = tpu.matmul %1, %0, %cst {dimension_numbers = #tpu.dot_dimension_numbers<[1], [0], [0], [1], [0, 0, 1, 1], [], []>} : vector<32x16xf32>, vector<16x8xf32>, vector<32x8xf32> -> vector<32x8xf32>
    %4 = vector.broadcast %2 : vector<32x1xf32> to vector<32x8xf32>
    %5 = arith.addf %3, %4 : vector<32x8xf32>
    %cst_5 = arith.constant 0.000000e+00 : f32
    %6 = vector.broadcast %cst_5 : f32 to vector<32x8xf32>
    %7 = arith.maximumf %5, %6 : vector<32x8xf32>
    %c0_6 = arith.constant 0 : index
    %c0_7 = arith.constant 0 : index
    %8 = vector.load %arg4[%c0_6, %c0_7] : memref<32x32xf32, #tpu.memory_space<vmem>>, vector<32x32xf32>
    %c0_8 = arith.constant 0 : index
    %c0_9 = arith.constant 0 : index
    %9 = vector.load %arg5[%c0_8, %c0_9] : memref<32x1xf32, #tpu.memory_space<vmem>>, vector<32x1xf32>
    %cst_10 = arith.constant dense<0.000000e+00> : vector<32x8xf32>
    %10 = tpu.matmul %8, %7, %cst_10 {dimension_numbers = #tpu.dot_dimension_numbers<[1], [0], [0], [1], [0, 0, 1, 1], [], []>} : vector<32x32xf32>, vector<32x8xf32>, vector<32x8xf32> -> vector<32x8xf32>
    %11 = vector.broadcast %9 : vector<32x1xf32> to vector<32x8xf32>
    %12 = arith.addf %10, %11 : vector<32x8xf32>
    %cst_11 = arith.constant 0.000000e+00 : f32
    %13 = vector.broadcast %cst_11 : f32 to vector<32x8xf32>
    %14 = arith.maximumf %12, %13 : vector<32x8xf32>
    %c0_12 = arith.constant 0 : index
    %c0_13 = arith.constant 0 : index
    %15 = vector.load %arg6[%c0_12, %c0_13] : memref<32x1xf32, #tpu.memory_space<vmem>>, vector<32x1xf32>
    %c0_14 = arith.constant 0 : index
    %c0_15 = arith.constant 0 : index
    %16 = vector.load %arg7[%c0_14, %c0_15] : memref<1x1xf32, #tpu.memory_space<vmem>>, vector<1x1xf32>
    %17 = vector.broadcast %15 : vector<32x1xf32> to vector<32x8xf32>
    %18 = arith.mulf %14, %17 : vector<32x8xf32>
    %cst_16 = arith.constant dense<0.000000e+00> : vector<8xf32>
    %19 = vector.multi_reduction <add>, %18, %cst_16 [0] : vector<32x8xf32> to vector<8xf32>
    %20 = vector.shape_cast %19 : vector<8xf32> to vector<1x8xf32>
    %21 = vector.broadcast %16 : vector<1x1xf32> to vector<1x8xf32>
    %22 = arith.addf %20, %21 : vector<1x8xf32>
    %c0_17 = arith.constant 0 : index
    %c0_18 = arith.constant 0 : index
    %23 = vector.load %arg8[%c0_17, %c0_18] : memref<1x8xf32, #tpu.memory_space<vmem>>, vector<1x8xf32>
    tpu.vector_store %arg8[%c0_17, %c0_18], %22 {strides = array<i32>} : memref<1x8xf32, #tpu.memory_space<vmem>>, vector<1x8xf32>,
    return
  }
  func.func @transform_0(%arg0: i32) -> (i32, i32) {
    %c0_i32 = arith.constant 0 : i32
    %c0_i32_0 = arith.constant 0 : i32
    return %c0_i32, %arg0 : i32, i32
  }
  func.func @transform_1(%arg0: i32) -> (i32, i32) {
    %c0_i32 = arith.constant 0 : i32
    %c0_i32_0 = arith.constant 0 : i32
    %c0_i32_1 = arith.constant 0 : i32
    return %c0_i32, %c0_i32_0 : i32, i32
  }
  func.func @transform_2(%arg0: i32) -> (i32, i32) {
    %c0_i32 = arith.constant 0 : i32
    %c0_i32_0 = arith.constant 0 : i32
    %c0_i32_1 = arith.constant 0 : i32
    return %c0_i32, %c0_i32_0 : i32, i32
  }
  func.func @transform_3(%arg0: i32) -> (i32, i32) {
    %c0_i32 = arith.constant 0 : i32
    %c0_i32_0 = arith.constant 0 : i32
    %c0_i32_1 = arith.constant 0 : i32
    return %c0_i32, %c0_i32_0 : i32, i32
  }
  func.func @transform_4(%arg0: i32) -> (i32, i32) {
    %c0_i32 = arith.constant 0 : i32
    %c0_i32_0 = arith.constant 0 : i32
    %c0_i32_1 = arith.constant 0 : i32
    return %c0_i32, %c0_i32_0 : i32, i32
  }
  func.func @transform_5(%arg0: i32) -> (i32, i32) {
    %c0_i32 = arith.constant 0 : i32
    %c0_i32_0 = arith.constant 0 : i32
    %c0_i32_1 = arith.constant 0 : i32
    return %c0_i32, %c0_i32_0 : i32, i32
  }
  func.func @transform_6(%arg0: i32) -> (i32, i32) {
    %c0_i32 = arith.constant 0 : i32
    %c0_i32_0 = arith.constant 0 : i32
    %c0_i32_1 = arith.constant 0 : i32
    return %c0_i32, %c0_i32_0 : i32, i32
  }
  func.func @transform_7(%arg0: i32) -> (i32, i32) {
    %c0_i32 = arith.constant 0 : i32
    %c0_i32_0 = arith.constant 0 : i32
    return %c0_i32, %arg0 : i32, i32
  }
}

</mosaic_0001>

<bundles_post_ra>
// kernel: tpu_custom_call.1
= control target key start
LH: loop header
LB: loop body
LE: loop exit
PB: predicated region body
PF: predicated region fallthrough
CT: control target
= control target key end

     0   :  { %s410_s0 = inlined_call_operand.vmem [shape: f32[16,8], index: 0, kind: input, shape index: {}]   ;;  %s411_s1 = inlined_call_operand.vmem [shape: f32[32,16], index: 1, kind: input, shape index: {}]   ;;  %s412_s2 = inlined_call_operand.vmem [shape: f32[32,1], index: 2, kind: input, shape index: {}]   ;;  %s413_s3 = inlined_call_operand.vmem [shape: f32[32,32], index: 3, kind: input, shape index: {}]   ;;  %s414_s4 = inlined_call_operand.vmem [shape: f32[32,1], index: 4, kind: input, shape index: {}]   ;;  %s415_s5 = inlined_call_operand.vmem [shape: f32[32,1], index: 5, kind: input, shape index: {}]   ;;  %s416_s6 = inlined_call_operand.<no memory space> [shape: f32[1,1], index: 6, kind: input, shape index: {}]   ;;  %s417_s7 = inlined_call_operand.hbm [shape: f32[1,8], index: 7, kind: output, shape index: {}]  }
   0x1   :  { %v12_v0 = vstv %s416_s6 }
   0x2   :  { %13 = vst [vmem:[#allocation2] sm:$0x1] %v12_v0 }
   0x3   :  { %v30_v1 = vld [vmem:[%s410_s0 + $0x8] sm:$0xff]  ;;  %v38_v2 = vld [vmem:[%s412_s2 + $0x18] sm:$0xff]  ;;  %v29_v3 = vld [vmem:[%s410_s0] sm:$0xff]  ;;  %v292_v4 = vmov 0   ;;  %vm59_vm0 = vcmask 130048  }
   0x4   :  { %263 = vset.pattern.permute.xlu0 %v292_v4  ;;  %255 = vmatpush.msra.mxu3 %v30_v1  ;;  %v32_v5 = vld [vmem:[%s411_s1 + $0x8] sm:$0xff]  ;;  %v31_v7 = vld [vmem:[%s411_s1] sm:$0xff] }
   0x5   :  { %v36_v6 = vld [vmem:[%s412_s2 + $0x8] sm:$0xff]  ;;  %56 = vperm.xlu0 %263, %v38_v2   ;;  %264 = vset.pattern.permute.xlu1 %v292_v4 }
   0x6   :  { %256 = vmatpush.msra.mxu3 %v29_v3  ;;  %46 = vperm.xlu1 %264, %v36_v6  }
   0x7   :  { %248 = vmatmul.msk.f32.vlgmr.msra.gmra.mxu3 %vm59_vm0, %v32_v5  ;;  %86 = vmatpush.msra.mxu0 %v30_v1 }
   0x8   :  { %265 = vset.pattern.permute.xlu2 %v292_v4 }
   0x9   :  { %14 = vsyncpa [#allocation4], 0  ;;  %87 = vmatpush.msra.mxu0 %v29_v3  ;;  %v37_v8 = vld [vmem:[%s412_s2 + $0x10] sm:$0xff]  ;;  %v35_v9 = vld [vmem:[%s412_s2] sm:$0xff]  ;;  %vm133_vm1 = vcmask 261120   ;;  %vm208_vm2 = vcmask 64512  }
   0xa   :  { %247 = vmatmul.msk.f32.vlgmr.msra.gmra.mxu0 %vm59_vm0, %v31_v7  ;;  %v33_v10 = vld [vmem:[%s411_s1 + $0x10] sm:$0xff]  ;;  %v112_v12 = vld [vmem:[%s414_s4 + $0x18] sm:$0xff]  ;;  %v180_v14 = vld [vmem:[%s415_s5 + $0x8] sm:$0xff]  ;;  %s238_s19 = sshll.u32 %s417_s7, 4  ;;  %vm229_vm3 = vcmask 57344   ;;  %s239_s19 = int_to_ptr.hbm [resolvable:$true] %s238_s19 }
   0xb   :  { %v111_v11 = vld [vmem:[%s414_s4 + $0x10] sm:$0xff]  ;;  %v34_v13 = vld [vmem:[%s411_s1 + $0x18] sm:$0xff]  ;;  %v183_v16 = vld [vmem:[#allocation2] sm:$0x1] }
   0xc   :  { %v181_v15 = vld [vmem:[%s415_s5 + $0x10] sm:$0xff]  ;;  %v109_v17 = vld [vmem:[%s414_s4] sm:$0xff]  ;;  %v110_v19 = vld [vmem:[%s414_s4 + $0x8] sm:$0xff] }
   0xd   :  { %51 = vperm.xlu0 %263, %v37_v8   ;;  %115 = vperm.xlu2 %265, %v109_v17   ;;  %v179_v23 = vld [vmem:[%s415_s5] sm:$0xff]  ;;  %v182_v31 = vld [vmem:[%s415_s5 + $0x18] sm:$0xff]  ;;  %v107_v38 = vld [vmem:[%s413_s3 + $0x10] sm:$0xff] }
   0xe   :  { %41 = vperm.xlu1 %264, %v35_v9   ;;  %v105_v37 = vld [vmem:[%s413_s3] sm:$0xff]  ;;  %v106_v39 = vld [vmem:[%s413_s3 + $0x8] sm:$0xff]  ;;  %v108_v40 = vld [vmem:[%s413_s3 + $0x18] sm:$0xff]  ;;  %s293_s3 = smov [#allocation3]  }
   0xf   :  { %249 = vmatmul.msk.f32.gmra.mxu3 %vm59_vm0, %v33_v10  ;;  %s236_s16 = sshll.u32 %s293_s3, 4  ;;  %s237_s16 = int_to_ptr.vmem [resolvable:$true] %s236_s16 }
  0x15   :  { %125 = vperm.xlu0 %263, %v111_v11   ;;  %120 = vperm.xlu2 %265, %v110_v19  }
  0x16   :  { %130 = vperm.xlu1 %264, %v112_v12  }
  0x17   :  { %250 = vmatmul.msk.f32.gmra.mxu3 %vm59_vm0, %v34_v13 }
  0x1d   :  { %191 = vperm.xlu0 %263, %v180_v14   ;;  %186 = vperm.xlu2 %265, %v179_v23  }
  0x1e   :  { %196 = vperm.xlu1 %264, %v181_v15  }
  0x25   :  { %224 = vperm.xlu0 %263, %v183_v16   ;;  %201 = vperm.xlu2 %265, %v182_v31  }
  0x67   :  { %v116_v41 = vpop.permute.xlu2 %115 }
  0x6f   :  { %v121_v42 = vpop.permute.xlu2 %120 }
  0x77   :  { %v57_v20 = vpop.permute.xlu0 %56  ;;  %v187_v50 = vpop.permute.xlu2 %186 }
  0x78   :  { %v47_v22 = vpop.permute.xlu1 %46 }
  0x7f   :  { %v52_v24 = vpop.permute.xlu0 %51  ;;  %v202_v2 = vpop.permute.xlu2 %201 }
  0x80   :  { %v42_v32 = vpop.permute.xlu1 %41 }
  0x87   :  { %v89_v28 = vpop.f32.mrf.mxu0  ;;  %v126_v44 = vpop.permute.xlu0 %125 }
  0x88   :  { %v90_v34 = vadd.f32 %v89_v28, %v42_v32  ;;  %v131_v46 = vpop.permute.xlu1 %130 }
  0x8a   :  { %v92_v18 = vpop.f32.mrf.mxu3  ;;  %v101_v36 = vmax.f32 %v90_v34, 0.0 }
  0x8b   :  { %v93_v29 = vadd.f32 %v92_v18, %v47_v22 }
  0x8d   :  { %v102_v35 = vmax.f32 %v93_v29, 0.0 }
  0x8f   :  { %v192_v56 = vpop.permute.xlu0 %191 }
  0x90   :  { %v197_v58 = vpop.permute.xlu1 %196 }
  0x92   :  { %v95_v21 = vpop.f32.mrf.mxu3 }
  0x93   :  { %v96_v26 = vadd.f32 %v95_v21, %v52_v24 }
  0x95   :  { %v103_v33 = vmax.f32 %v96_v26, 0.0 }
  0x97   :  { %v225_v12 = vpop.permute.xlu0 %224 }
  0x98   :  { %v227_v14 = vperm.slane %v225_v12, 0 }
  0x9a   :  { %v98_v25 = vpop.f32.mrf.mxu3 }
  0x9b   :  { %v99_v27 = vadd.f32 %v98_v25, %v57_v20 }
  0x9d   :  { %v104_v30 = vmax.f32 %v99_v27, 0.0 }
  0x9f   :  { %158 = vmatpush.msra.mxu1 %v104_v30  ;;  %257 = vmatpush.msra.mxu2 %v104_v30 }
  0xa1   :  { %159 = vmatpush.msra.mxu1 %v103_v33  ;;  %258 = vmatpush.msra.mxu2 %v103_v33 }
  0xa3   :  { %160 = vmatpush.msra.mxu1 %v102_v35  ;;  %259 = vmatpush.msra.mxu2 %v102_v35 }
  0xa5   :  { %161 = vmatpush.msra.mxu1 %v101_v36  ;;  %260 = vmatpush.msra.mxu2 %v101_v36 }
  0xa6   :  { %251 = vmatmul.msk.f32.vlgmr.msra.gmra.mxu1 %vm133_vm1, %v105_v37  ;;  %253 = vmatmul.msk.f32.vlgmr.msra.gmra.mxu2 %vm133_vm1, %v107_v38 }
  0xae   :  { %252 = vmatmul.msk.f32.gmra.mxu1 %vm133_vm1, %v106_v39  ;;  %254 = vmatmul.msk.f32.gmra.mxu2 %vm133_vm1, %v108_v40 }
 0x123   :  { %v163_v43 = vpop.f32.mrf.mxu1 }
 0x124   :  { %v164_v45 = vadd.f32 %v163_v43, %v116_v41 }
 0x126   :  { %v175_v48 = vmax.f32 %v164_v45, 0.0 }
 0x128   :  { %v204_v53 = vmul.f32 %v187_v50, %v175_v48 }
 0x129   :  { %v169_v47 = vpop.f32.mrf.mxu2 }
 0x12a   :  { %v170_v49 = vadd.f32 %v169_v47, %v126_v44  ;;  %v209_v60 = vsel %vm208_vm2, %v204_v53, 0.0 }
 0x12b   :  { %v166_v51 = vpop.f32.mrf.mxu1 }
 0x12c   :  { %v167_v52 = vadd.f32 %v166_v51, %v121_v42  ;;  %v177_v54 = vmax.f32 %v170_v49, 0.0 }
 0x12e   :  { %v176_v55 = vmax.f32 %v167_v52, 0.0  ;;  %v206_v61 = vmul.f32 %v197_v58, %v177_v54 }
 0x130   :  { %v205_v57 = vmul.f32 %v192_v56, %v176_v55  ;;  %v212_v3 = vsel %vm208_vm2, %v206_v61, 0.0 }
 0x131   :  { %v172_v59 = vpop.f32.mrf.mxu2 }
 0x132   :  { %v210_v62 = vsel %vm208_vm2, %v205_v57, 0.0  ;;  %v173_v63 = vadd.f32 %v172_v59, %v131_v46 }
 0x133   :  { %v211_v0 = vadd.f32 %v210_v62, %v209_v60 }
 0x134   :  { %v178_v1 = vmax.f32 %v173_v63, 0.0 }
 0x135   :  { %v213_v5 = vadd.f32 %v212_v3, %v211_v0 }
 0x136   :  { %v207_v4 = vmul.f32 %v202_v2, %v178_v1 }
 0x138   :  { %v214_v6 = vsel %vm208_vm2, %v207_v4, 0.0 }
 0x139   :  { %v215_v7 = vadd.f32 %v214_v6, %v213_v5 }
 0x13b   :  { %v216_v8 = vrot.slane %v215_v7, 4 }
 0x13d   :  { %v217_v9 = vadd.f32 %v216_v8, %v215_v7 }
 0x13f   :  { %v218_v10 = vrot.slane %v217_v9, 2 }
 0x141   :  { %v219_v11 = vadd.f32 %v218_v10, %v217_v9 }
 0x143   :  { %v220_v13 = vrot.slane %v219_v11, 1 }
 0x145   :  { %v221_v15 = vadd.f32 %v220_v13, %v219_v11 }
 0x147   :  { %v228_v16 = vadd.f32 %v227_v14, %v221_v15 }
 0x149   :  { %230 = vst.msk [vmem:[#allocation3] sm:$0x1] %vm229_vm3, %v228_v16 }
 0x14a   :  { %241 = dma.vmem_to_hbm [thread:$0]  %s237_s16, 16, %s239_s19, [#allocation4]  }
 0x14b   :  { %290 = dma.done.wait [#allocation4], 16  }
 0x14c   :  { %291 = vsyncadd [#allocation4], 4294967280 }
 0x14d   :  { %246 = vsyncpa [#allocation4], 1 }

</bundles_post_ra>
